<compile_context>
chip_gen: v7x
topology: tpu7x:2x2x1
jax: 0.10.0
libtpu: 0.0.40
codegen_flags: <defaults>
</compile_context>

<pallas_src>
import functools
from typing import NamedTuple

import jax
import jax.numpy as jnp
import numpy as np
from jax.experimental import pallas as pl
from jax.experimental.pallas import tpu as pltpu


# ----------------------------- configuration -----------------------------
IN_DIM = 7                 # 3 positions + 4 quaternion components (before augmentation)
HIDDEN_DIM = 32
OUT_DIM = 3
N_LAYERS = 3               # hidden blocks; net has N_LAYERS + 1 Linear layers
AUG_IN_DIM = IN_DIM + 2    # +1 radial norm, +1 axis-angle angle (append mode)
AUG_K = IN_DIM + 3         # matmul contraction rows: x(7) + r + angle + ones(bias)

BATCH = 8                  # small smoke-test batch; the kernel is designed/tiled for large B


def _round_up(n, m):
    return ((n + m - 1) // m) * m


# Abramowitz & Stegun 4.4.46 arccos approximation, |err| <= 2e-8, valid on [0, 1];
# extended to [-1, 0] via acos(x) = pi - acos(-x).  Uses only mul/add/sqrt/select,
# all of which are guaranteed to lower in Mosaic (lax.acos is not).
_ACOS_COEFFS = (1.5707963050, -0.2145988016, 0.0889789874, -0.0501743046,
                0.0308918810, -0.0170881256, 0.0066700901, -0.0012624911)


def _acos_poly(x):
    ax = jnp.abs(x)
    p = _ACOS_COEFFS[7]
    for c in _ACOS_COEFFS[6::-1]:
        p = p * ax + c
    acos_pos = p * jnp.sqrt(jnp.maximum(1.0 - ax, 0.0))
    return jnp.where(x < 0.0, jnp.pi - acos_pos, acos_pos)


# ------------------------------ Pallas kernel ------------------------------
def nnskip_kernel(n_hidden, use_bf16,
                  xt_ref, w_in_ref, wh_ref, bh_ref, wo_ref, bo_ref, out_ref):
    """One batch tile of the skip-shared MLP, batch on the lane axis.

    xt_ref  : (IN_DIM, BT)          raw input, (feature, batch)-major (batch on lanes)
    w_in    : (2H, AUG_K)           fused [input_connection; net[0]] weight, f32
                                    columns: x0..x6 | r | angle | bias(*ones)
    wh/bh   : (n_hidden, H, H) / (n_hidden, H, 1)    net[1..n_layers-1]
    wo/bo   : (OUT_DIM, H) / (OUT_DIM, 1)            net[-1]
    out_ref : (OUT_DIM, BT)
    """
    xt = xt_ref[...].astype(jnp.float32)                        # (7, BT)

    # --- fused input augmentation (lane-dense VPU rows; no HBM round trip) ---
    px, py, pz, qw = xt[0:1], xt[1:2], xt[2:3], xt[3:4]
    r = jnp.sqrt(px * px + py * py + pz * pz)                   # (1, BT) radial norm
    angle = 2.0 * _acos_poly(jnp.clip(qw, -1.0, 1.0))           # (1, BT) axis-angle angle
    ones = jnp.ones_like(r)                                     # bias row

    # (AUG_K, BT) augmented slab: r/angle/bias ride the matmul instead of rank-1 VPU updates.
    xa = jnp.concatenate([xt, r, angle, ones], axis=0)

    # --- fused input_connection + net[0]: one (2H, AUG_K) @ (AUG_K, BT) MXU push, kept f32
    #     so the shared skip x_t (reused by every layer) carries no bf16 error. ---
    pre = jnp.dot(w_in_ref[...], xa, preferred_element_type=jnp.float32)   # (2H, BT)
    x_t = pre[:HIDDEN_DIM]                                      # shared skip (free sublane split)
    h = jnp.maximum(pre[HIDDEN_DIM:] + x_t, 0.0)                # ReLU(net[0](x_aug) + x_t)

    # --- remaining hidden blocks (statically unrolled; weights VMEM-resident) ---
    for i in range(n_hidden):
        h_mm = h.astype(jnp.bfloat16) if use_bf16 else h        # bf16 only on the (32,32) matmuls
        z = jnp.dot(wh_ref[i], h_mm, preferred_element_type=jnp.float32)
        h = jnp.maximum(z + bh_ref[i] + x_t, 0.0)
        # TODO(synk): train-mode Dropout mask would go here; eval mode is identity.

    # --- output layer (f32): (OUT_DIM, BT) store is lane-dense ---
    out = jnp.dot(wo_ref[...], h, preferred_element_type=jnp.float32) + bo_ref[...]
    out_ref[...] = out.astype(out_ref.dtype)


# ------------------------------ parameter prep (hoisted, done once) ------------------------------
class NNSkipPrepared(NamedTuple):
    w_in: jax.Array    # (2H, AUG_K) f32
    wh: jax.Array      # (n_hidden, H, H) f32 or bf16
    bh: jax.Array      # (n_hidden, H, 1) f32
    wo: jax.Array      # (OUT_DIM, H) f32
    bo: jax.Array      # (OUT_DIM, 1) f32


def prepare_params(params, use_bf16=False):
    """Fuse/reshape PyTorch-orientation params once (NOT per forward call)."""
    w_ic, b_ic = params["input_connection"]        # (H, 9), (H,)
    net = params["net"]
    w0, b0 = net[0]                                # (H, 9), (H,)
    wo, bo = net[-1]                               # (3, H), (3,)
    hidden = net[1:-1]
    # TODO(synk): n_layers == 1 (empty hidden stack) would need a special case.
    assert len(hidden) >= 1, "kernel assumes n_layers >= 2"

    w_cat = jnp.concatenate([w_ic, w0], axis=0).astype(jnp.float32)        # (2H, 9): x|r|angle cols
    b_cat = jnp.concatenate([b_ic, b0], axis=0).astype(jnp.float32)        # (2H,)
    w_in = jnp.concatenate([w_cat, b_cat[:, None]], axis=1)                # (2H, AUG_K) bias folded in

    mm = jnp.bfloat16 if use_bf16 else jnp.float32
    wh = jnp.stack([w for w, _ in hidden], axis=0).astype(mm)              # (n_hidden, H, H)
    bh = jnp.stack([b for _, b in hidden], axis=0)[:, :, None].astype(jnp.float32)
    return NNSkipPrepared(w_in, wh, bh,
                          wo.astype(jnp.float32), bo[:, None].astype(jnp.float32))


# ------------------------------ wrapper ------------------------------
def nnskip_pallas(x, prepared, *, block_b=8192, x_transposed=False, transpose_output=True):
    """Skip-shared MLP forward.

    x        : (B, IN_DIM) raw input, or (IN_DIM, B) if x_transposed=True (copy-free path).
    prepared : NNSkipPrepared from prepare_params (built once).
    Returns (B, OUT_DIM), or (OUT_DIM, B) if transpose_output=False.
    """
    w_in, wh, bh, wo, bo = prepared
    n_hidden = wh.shape[0]
    use_bf16 = wh.dtype == jnp.bfloat16

    if x_transposed:
        assert x.shape[0] == IN_DIM
        xt = x                                   # zero-copy input path
    else:
        assert x.shape[1] == IN_DIM
        # Single XLA transpose (~56 B/row); no jnp.pad — ragged batches are handled by Pallas
        # partial (masked) boundary blocks.  Use x_transposed=True to skip this copy entirely.
        xt = x.T
    B = xt.shape[1]

    # Batch tile: multiple of 128 (lane width), as large as possible to amortize the
    # ~0.35-0.6 us per-grid-step overhead.  VMEM per tile is tiny in this layout
    # (x tile (7, bt) + out tile (3, bt) + resident weights ~ < 1 MiB at bt=8192).
    bt = min(block_b, max(128, _round_up(B, 128)))
    # v7x has 2 TensorCores: keep at least 2 tiles on the "parallel" axis when the batch allows.
    if B >= 256 and pl.cdiv(B, bt) < 2:
        bt = max(128, _round_up(pl.cdiv(B, 2), 128))
    grid = (pl.cdiv(B, bt),)

    def full_spec(a):
        return pl.BlockSpec(a.shape, lambda i, nd=a.ndim: (0,) * nd)   # resident in VMEM

    # Advisory cost estimate: with K <= 32 the MXU is structurally underfilled; this kernel is
    # VALU / overhead / HBM bound, and the FLOP count is tiny.
    flops = 2 * B * (2 * HIDDEN_DIM * AUG_K
                     + n_hidden * HIDDEN_DIM * HIDDEN_DIM
                     + OUT_DIM * HIDDEN_DIM)
    weight_bytes = sum(int(a.size) * a.dtype.itemsize for a in prepared)
    bytes_accessed = 4 * B * (IN_DIM + OUT_DIM) + weight_bytes

    kernel = functools.partial(nnskip_kernel, n_hidden, use_bf16)
    out = pl.pallas_call(
        kernel,
        out_shape=jax.ShapeDtypeStruct((OUT_DIM, B), jnp.float32),
        grid=grid,
        in_specs=[
            pl.BlockSpec((IN_DIM, bt), lambda i: (0, i)),     # x tile: batch on lanes, dense DMA
            full_spec(w_in), full_spec(wh), full_spec(bh), full_spec(wo), full_spec(bo),
        ],
        out_specs=pl.BlockSpec((OUT_DIM, bt), lambda i: (0, i)),   # lane-dense output store
        compiler_params=pltpu.CompilerParams(
            dimension_semantics=("parallel",),                # shard batch tiles over TCs (v7x)
            vmem_limit_bytes=32 * 1024 * 1024,                # headroom for block_b sweeps
        ),
        cost_estimate=pl.CostEstimate(flops=flops, transcendentals=2 * B,
                                      bytes_accessed=bytes_accessed),
    )(xt, w_in, wh, bh, wo, bo)

    return out.T if transpose_output else out


# ------------------------------ plain-JAX reference ------------------------------
def init_params(key, n_layers=N_LAYERS):
    """PyTorch-Linear-style init; weights stored PyTorch-style as (fan_out, fan_in)."""
    def linear(k, fan_in, fan_out):
        kw, kb = jax.random.split(k)
        bound = 1.0 / np.sqrt(fan_in)
        w = jax.random.uniform(kw, (fan_out, fan_in), jnp.float32, -bound, bound)
        b = jax.random.uniform(kb, (fan_out,), jnp.float32, -bound, bound)
        return w, b

    keys = jax.random.split(key, n_layers + 2)
    net = [linear(keys[1], AUG_IN_DIM, HIDDEN_DIM)]
    net += [linear(keys[2 + i], HIDDEN_DIM, HIDDEN_DIM) for i in range(n_layers - 1)]
    net += [linear(keys[n_layers + 1], HIDDEN_DIM, OUT_DIM)]
    return {"input_connection": linear(keys[0], AUG_IN_DIM, HIDDEN_DIM), "net": net}


def augment_input_ref(x):
    """BaseNN._augment_input ('r' + 'a', append): angle per rowan.to_axis_angle."""
    r = jnp.linalg.norm(x[:, :3], axis=1, keepdims=True)
    angle = 2.0 * jnp.arccos(jnp.clip(x[:, 3:4], -1.0, 1.0))
    return jnp.concatenate([x, r, angle], axis=1)


def reference_forward(x, params):
    """Pure-JAX reference of NNSkipShared.forward (eval mode)."""
    hp = jax.lax.Precision.HIGHEST
    w_ic, b_ic = params["input_connection"]
    net = params["net"]
    xa = augment_input_ref(x)
    x_t = jnp.dot(xa, w_ic.T, precision=hp) + b_ic
    h = xa
    for w, b in net[:-1]:
        h = jnp.maximum(jnp.dot(h, w.T, precision=hp) + b + x_t, 0.0)
    wo, bo = net[-1]
    return jnp.dot(h, wo.T, precision=hp) + bo


# ---------------------------------- main ----------------------------------
if __name__ == "__main__":
    key = jax.random.PRNGKey(0)
    kx, kp, kx2 = jax.random.split(key, 3)

    params = init_params(kp)
    prepared = prepare_params(params)                     # weight fusion hoisted: done once

    # Small smoke test (single, partially-masked tile).
    x = jax.random.normal(kx, (BATCH, IN_DIM), dtype=jnp.float32)
    ref = jax.block_until_ready(reference_forward(x, params))
    out = jax.block_until_ready(nnskip_pallas(x, prepared))
    np.testing.assert_allclose(np.asarray(out), np.asarray(ref), rtol=3e-2, atol=3e-2)

    # Copy-free layout path: (IN_DIM, B)-major input, (OUT_DIM, B) output.
    out_db = jax.block_until_ready(
        nnskip_pallas(x.T, prepared, x_transposed=True, transpose_output=False))
    np.testing.assert_allclose(np.asarray(out_db.T), np.asarray(ref), rtol=3e-2, atol=3e-2)

    # Multi-tile grid with a ragged final tile (exercises the pipelined batch grid).
    x2 = jax.random.normal(kx2, (300, IN_DIM), dtype=jnp.float32)
    ref2 = jax.block_until_ready(reference_forward(x2, params))
    out2 = jax.block_until_ready(nnskip_pallas(x2, prepared, block_b=128))
    np.testing.assert_allclose(np.asarray(out2), np.asarray(ref2), rtol=3e-2, atol=3e-2)

    # bf16 hidden-matmul path (input/skip projection and output layer stay f32).
    prepared_bf16 = prepare_params(params, use_bf16=True)
    out_bf16 = jax.block_until_ready(nnskip_pallas(x, prepared_bf16))
    np.testing.assert_allclose(np.asarray(out_bf16), np.asarray(ref), rtol=5e-2, atol=5e-2)

    print("KERNEL_OK")
</pallas_src>

<mosaic_0001>
module attributes {stable_mosaic.version = 11 : i64} {
  func.func @nnskip_kernel(%arg0: i32, %arg1: memref<7x128xf32, #tpu.memory_space<vmem>>, %arg2: memref<64x10xf32, #tpu.memory_space<vmem>>, %arg3: memref<2x32x32xf32, #tpu.memory_space<vmem>>, %arg4: memref<2x32x1xf32, #tpu.memory_space<vmem>>, %arg5: memref<3x32xf32, #tpu.memory_space<vmem>>, %arg6: memref<3x1xf32, #tpu.memory_space<vmem>>, %arg7: memref<3x128xf32, #tpu.memory_space<vmem>>) attributes {dimension_semantics = [#tpu.dimension_semantics<parallel>], iteration_bounds = array<i64: 1>, scalar_prefetch = 0 : i64, scratch_operands = 0 : i64, tpu.core_type = #tpu.core_type<tc>, window_params = [{transform_indices = @transform_0, window_bounds = array<i64: 7, 128>}, {pipeline_mode = #tpu.pipeline_mode<synchronous>, transform_indices = @transform_1, window_bounds = array<i64: 64, 10>}, {pipeline_mode = #tpu.pipeline_mode<synchronous>, transform_indices = @transform_2, window_bounds = array<i64: 2, 32, 32>}, {pipeline_mode = #tpu.pipeline_mode<synchronous>, transform_indices = @transform_3, window_bounds = array<i64: 2, 32, 1>}, {pipeline_mode = #tpu.pipeline_mode<synchronous>, transform_indices = @transform_4, window_bounds = array<i64: 3, 32>}, {pipeline_mode = #tpu.pipeline_mode<synchronous>, transform_indices = @transform_5, window_bounds = array<i64: 3, 1>}, {transform_indices = @transform_6, window_bounds = array<i64: 3, 128>}]} {
    %c0 = arith.constant 0 : index
    %c0_0 = arith.constant 0 : index
    %0 = vector.load %arg1[%c0, %c0_0] : memref<7x128xf32, #tpu.memory_space<vmem>>, vector<7x128xf32>
    %1 = vector.extract_strided_slice %0 {offsets = [0, 0], sizes = [1, 128], strides = [1, 1]} : vector<7x128xf32> to vector<1x128xf32>
    %2 = vector.extract_strided_slice %0 {offsets = [1, 0], sizes = [1, 128], strides = [1, 1]} : vector<7x128xf32> to vector<1x128xf32>
    %3 = vector.extract_strided_slice %0 {offsets = [2, 0], sizes = [1, 128], strides = [1, 1]} : vector<7x128xf32> to vector<1x128xf32>
    %4 = vector.extract_strided_slice %0 {offsets = [3, 0], sizes = [1, 128], strides = [1, 1]} : vector<7x128xf32> to vector<1x128xf32>
    %5 = arith.mulf %1, %1 : vector<1x128xf32>
    %6 = arith.mulf %2, %2 : vector<1x128xf32>
    %7 = arith.addf %5, %6 : vector<1x128xf32>
    %8 = arith.mulf %3, %3 : vector<1x128xf32>
    %9 = arith.addf %7, %8 : vector<1x128xf32>
    %10 = math.sqrt %9 : vector<1x128xf32>
    %cst = arith.constant -1.000000e+00 : f32
    %cst_1 = arith.constant 1.000000e+00 : f32
    %11 = vector.broadcast %cst : f32 to vector<1x128xf32>
    %12 = arith.maximumf %11, %4 : vector<1x128xf32>
    %13 = vector.broadcast %cst_1 : f32 to vector<1x128xf32>
    %14 = arith.minimumf %13, %12 : vector<1x128xf32>
    %15 = math.absf %14 : vector<1x128xf32>
    %cst_2 = arith.constant -0.0012624911 : f32
    %16 = vector.broadcast %cst_2 : f32 to vector<1x128xf32>
    %17 = arith.mulf %16, %15 : vector<1x128xf32>
    %cst_3 = arith.constant 6.670090e-03 : f32
    %18 = vector.broadcast %cst_3 : f32 to vector<1x128xf32>
    %19 = arith.addf %17, %18 : vector<1x128xf32>
    %20 = arith.mulf %19, %15 : vector<1x128xf32>
    %cst_4 = arith.constant -0.0170881264 : f32
    %21 = vector.broadcast %cst_4 : f32 to vector<1x128xf32>
    %22 = arith.addf %20, %21 : vector<1x128xf32>
    %23 = arith.mulf %22, %15 : vector<1x128xf32>
    %cst_5 = arith.constant 0.0308918804 : f32
    %24 = vector.broadcast %cst_5 : f32 to vector<1x128xf32>
    %25 = arith.addf %23, %24 : vector<1x128xf32>
    %26 = arith.mulf %25, %15 : vector<1x128xf32>
    %cst_6 = arith.constant -0.0501743034 : f32
    %27 = vector.broadcast %cst_6 : f32 to vector<1x128xf32>
    %28 = arith.addf %26, %27 : vector<1x128xf32>
    %29 = arith.mulf %28, %15 : vector<1x128xf32>
    %cst_7 = arith.constant 0.0889789909 : f32
    %30 = vector.broadcast %cst_7 : f32 to vector<1x128xf32>
    %31 = arith.addf %29, %30 : vector<1x128xf32>
    %32 = arith.mulf %31, %15 : vector<1x128xf32>
    %cst_8 = arith.constant -0.214598805 : f32
    %33 = vector.broadcast %cst_8 : f32 to vector<1x128xf32>
    %34 = arith.addf %32, %33 : vector<1x128xf32>
    %35 = arith.mulf %34, %15 : vector<1x128xf32>
    %cst_9 = arith.constant 1.57079625 : f32
    %36 = vector.broadcast %cst_9 : f32 to vector<1x128xf32>
    %37 = arith.addf %35, %36 : vector<1x128xf32>
    %cst_10 = arith.constant 1.000000e+00 : f32
    %38 = vector.broadcast %cst_10 : f32 to vector<1x128xf32>
    %39 = arith.subf %38, %15 : vector<1x128xf32>
    %cst_11 = arith.constant 0.000000e+00 : f32
    %40 = vector.broadcast %cst_11 : f32 to vector<1x128xf32>
    %41 = arith.maximumf %39, %40 : vector<1x128xf32>
    %42 = math.sqrt %41 : vector<1x128xf32>
    %43 = arith.mulf %37, %42 : vector<1x128xf32>
    %cst_12 = arith.constant 0.000000e+00 : f32
    %44 = vector.broadcast %cst_12 : f32 to vector<1x128xf32>
    %45 = arith.cmpf olt, %14, %44 : vector<1x128xf32>
    %cst_13 = arith.constant 3.14159274 : f32
    %46 = vector.broadcast %cst_13 : f32 to vector<1x128xf32>
    %47 = arith.subf %46, %43 : vector<1x128xf32>
    %48 = arith.select %45, %47, %43 : vector<1x128xi1>, vector<1x128xf32>
    %cst_14 = arith.constant 2.000000e+00 : f32
    %49 = vector.broadcast %cst_14 : f32 to vector<1x128xf32>
    %50 = arith.mulf %49, %48 : vector<1x128xf32>
    %cst_15 = arith.constant 1.000000e+00 : f32
    %51 = vector.broadcast %cst_15 : f32 to vector<1x128xf32>
    %52 = tpu.concatenate %0, %10, %50, %51 in 0 : vector<7x128xf32>, vector<1x128xf32>, vector<1x128xf32>, vector<1x128xf32> -> vector<10x128xf32>
    %c0_16 = arith.constant 0 : index
    %c0_17 = arith.constant 0 : index
    %53 = vector.load %arg2[%c0_16, %c0_17] : memref<64x10xf32, #tpu.memory_space<vmem>>, vector<64x10xf32>
    %cst_18 = arith.constant dense<0.000000e+00> : vector<64x128xf32>
    %54 = tpu.matmul %53, %52, %cst_18 {dimension_numbers = #tpu.dot_dimension_numbers<[1], [0], [0], [1], [0, 0, 1, 1], [], []>} : vector<64x10xf32>, vector<10x128xf32>, vector<64x128xf32> -> vector<64x128xf32>
    %55 = vector.extract_strided_slice %54 {offsets = [0, 0], sizes = [32, 128], strides = [1, 1]} : vector<64x128xf32> to vector<32x128xf32>
    %56 = vector.extract_strided_slice %54 {offsets = [32, 0], sizes = [32, 128], strides = [1, 1]} : vector<64x128xf32> to vector<32x128xf32>
    %57 = arith.addf %56, %55 : vector<32x128xf32>
    %cst_19 = arith.constant 0.000000e+00 : f32
    %58 = vector.broadcast %cst_19 : f32 to vector<32x128xf32>
    %59 = arith.maximumf %57, %58 : vector<32x128xf32>
    %c0_20 = arith.constant 0 : index
    %c0_21 = arith.constant 0 : index
    %c0_22 = arith.constant 0 : index
    %60 = vector.load %arg3[%c0_20, %c0_21, %c0_22] : memref<2x32x32xf32, #tpu.memory_space<vmem>>, vector<1x32x32xf32>
    %61 = vector.shape_cast %60 : vector<1x32x32xf32> to vector<32x32xf32>
    %cst_23 = arith.constant dense<0.000000e+00> : vector<32x128xf32>
    %62 = tpu.matmul %61, %59, %cst_23 {dimension_numbers = #tpu.dot_dimension_numbers<[1], [0], [0], [1], [0, 0, 1, 1], [], []>} : vector<32x32xf32>, vector<32x128xf32>, vector<32x128xf32> -> vector<32x128xf32>
    %c0_24 = arith.constant 0 : index
    %c0_25 = arith.constant 0 : index
    %c0_26 = arith.constant 0 : index
    %63 = vector.load %arg4[%c0_24, %c0_25, %c0_26] : memref<2x32x1xf32, #tpu.memory_space<vmem>>, vector<1x32x1xf32>
    %64 = vector.shape_cast %63 : vector<1x32x1xf32> to vector<32x1xf32>
    %65 = vector.broadcast %64 : vector<32x1xf32> to vector<32x128xf32>
    %66 = arith.addf %62, %65 : vector<32x128xf32>
    %67 = arith.addf %66, %55 : vector<32x128xf32>
    %cst_27 = arith.constant 0.000000e+00 : f32
    %68 = vector.broadcast %cst_27 : f32 to vector<32x128xf32>
    %69 = arith.maximumf %67, %68 : vector<32x128xf32>
    %c1 = arith.constant 1 : index
    %c0_28 = arith.constant 0 : index
    %c0_29 = arith.constant 0 : index
    %70 = vector.load %arg3[%c1, %c0_28, %c0_29] : memref<2x32x32xf32, #tpu.memory_space<vmem>>, vector<1x32x32xf32>
    %71 = vector.shape_cast %70 : vector<1x32x32xf32> to vector<32x32xf32>
    %cst_30 = arith.constant dense<0.000000e+00> : vector<32x128xf32>
    %72 = tpu.matmul %71, %69, %cst_30 {dimension_numbers = #tpu.dot_dimension_numbers<[1], [0], [0], [1], [0, 0, 1, 1], [], []>} : vector<32x32xf32>, vector<32x128xf32>, vector<32x128xf32> -> vector<32x128xf32>
    %c1_31 = arith.constant 1 : index
    %c0_32 = arith.constant 0 : index
    %c0_33 = arith.constant 0 : index
    %73 = vector.load %arg4[%c1_31, %c0_32, %c0_33] : memref<2x32x1xf32, #tpu.memory_space<vmem>>, vector<1x32x1xf32>
    %74 = vector.shape_cast %73 : vector<1x32x1xf32> to vector<32x1xf32>
    %75 = vector.broadcast %74 : vector<32x1xf32> to vector<32x128xf32>
    %76 = arith.addf %72, %75 : vector<32x128xf32>
    %77 = arith.addf %76, %55 : vector<32x128xf32>
    %cst_34 = arith.constant 0.000000e+00 : f32
    %78 = vector.broadcast %cst_34 : f32 to vector<32x128xf32>
    %79 = arith.maximumf %77, %78 : vector<32x128xf32>
    %c0_35 = arith.constant 0 : index
    %c0_36 = arith.constant 0 : index
    %80 = vector.load %arg5[%c0_35, %c0_36] : memref<3x32xf32, #tpu.memory_space<vmem>>, vector<3x32xf32>
    %cst_37 = arith.constant dense<0.000000e+00> : vector<3x128xf32>
    %81 = tpu.matmul %80, %79, %cst_37 {dimension_numbers = #tpu.dot_dimension_numbers<[1], [0], [0], [1], [0, 0, 1, 1], [], []>} : vector<3x32xf32>, vector<32x128xf32>, vector<3x128xf32> -> vector<3x128xf32>
    %c0_38 = arith.constant 0 : index
    %c0_39 = arith.constant 0 : index
    %82 = vector.load %arg6[%c0_38, %c0_39] : memref<3x1xf32, #tpu.memory_space<vmem>>, vector<3x1xf32>
    %83 = vector.broadcast %82 : vector<3x1xf32> to vector<3x128xf32>
    %84 = arith.addf %81, %83 : vector<3x128xf32>
    %c0_40 = arith.constant 0 : index
    %c0_41 = arith.constant 0 : index
    %85 = vector.load %arg7[%c0_40, %c0_41] : memref<3x128xf32, #tpu.memory_space<vmem>>, vector<3x128xf32>
    tpu.vector_store %arg7[%c0_40, %c0_41], %84 {strides = array<i32>} : memref<3x128xf32, #tpu.memory_space<vmem>>, vector<3x128xf32>,
    return
  }
  func.func @transform_0(%arg0: i32) -> (i32, i32) {
    %c0_i32 = arith.constant 0 : i32
    %c0_i32_0 = arith.constant 0 : i32
    return %c0_i32, %arg0 : i32, i32
  }
  func.func @transform_1(%arg0: i32) -> (i32, i32) {
    %c0_i32 = arith.constant 0 : i32
    %c0_i32_0 = arith.constant 0 : i32
    %c0_i32_1 = arith.constant 0 : i32
    return %c0_i32, %c0_i32_0 : i32, i32
  }
  func.func @transform_2(%arg0: i32) -> (i32, i32, i32) {
    %c0_i32 = arith.constant 0 : i32
    %c0_i32_0 = arith.constant 0 : i32
    %c0_i32_1 = arith.constant 0 : i32
    %c0_i32_2 = arith.constant 0 : i32
    return %c0_i32, %c0_i32_0, %c0_i32_1 : i32, i32, i32
  }
  func.func @transform_3(%arg0: i32) -> (i32, i32, i32) {
    %c0_i32 = arith.constant 0 : i32
    %c0_i32_0 = arith.constant 0 : i32
    %c0_i32_1 = arith.constant 0 : i32
    %c0_i32_2 = arith.constant 0 : i32
    return %c0_i32, %c0_i32_0, %c0_i32_1 : i32, i32, i32
  }
  func.func @transform_4(%arg0: i32) -> (i32, i32) {
    %c0_i32 = arith.constant 0 : i32
    %c0_i32_0 = arith.constant 0 : i32
    %c0_i32_1 = arith.constant 0 : i32
    return %c0_i32, %c0_i32_0 : i32, i32
  }
  func.func @transform_5(%arg0: i32) -> (i32, i32) {
    %c0_i32 = arith.constant 0 : i32
    %c0_i32_0 = arith.constant 0 : i32
    %c0_i32_1 = arith.constant 0 : i32
    return %c0_i32, %c0_i32_0 : i32, i32
  }
  func.func @transform_6(%arg0: i32) -> (i32, i32) {
    %c0_i32 = arith.constant 0 : i32
    %c0_i32_0 = arith.constant 0 : i32
    return %c0_i32, %arg0 : i32, i32
  }
}

</mosaic_0001>

<bundles_post_ra>
// kernel: tpu_custom_call.1
= control target key start
LH: loop header
LB: loop body
LE: loop exit
PB: predicated region body
PF: predicated region fallthrough
CT: control target
= control target key end

     0   :  { %vm89_vm0 = vcmask 80896   ;;  %s943_s0 = inlined_call_operand.vmem [shape: f32[7,8], index: 0, kind: input, shape index: {}]   ;;  %s944_s1 = inlined_call_operand.vmem [shape: f32[64,10], index: 1, kind: input, shape index: {}]   ;;  %s945_s2 = inlined_call_operand.vmem [shape: f32[2,32,32], index: 2, kind: input, shape index: {}]   ;;  %s946_s3 = inlined_call_operand.vmem [shape: f32[2,32,1], index: 3, kind: input, shape index: {}]   ;;  %s947_s4 = inlined_call_operand.vmem [shape: f32[3,32], index: 4, kind: input, shape index: {}]   ;;  %s948_s5 = inlined_call_operand.vmem [shape: f32[3,1], index: 5, kind: input, shape index: {}]   ;;  %s949_s6 = inlined_call_operand.hbm [shape: f32[3,8], index: 6, kind: output, shape index: {}]  }
   0x1   :  { %v24_v0 = vld [vmem:[%s943_s0] sm:$0x7f] }
   0x2   :  { %v25_v1 = vmul.f32 %v24_v0, %v24_v0  ;;  %v595_v2 = vclamps-f32 %v24_v0, 1.0  ;;  %v81_v3 = vld [vmem:[%s944_s1] sm:$0xff] }
   0x3   :  { %657 = vmatprep.mubr.msk.f32.mxu0 %vm89_vm0, %v81_v3 }
   0x4   :  { %v27_v4 = vrot.slane %v25_v1, 1  ;;  %v42_v5 = vand.u32 2147483647, %v595_v2 }
   0x5   :  { %11 = vsyncpa [#allocation3], 0  ;;  %v30_v9 = vrot.slane %v25_v1, 2  ;;  %vm67_vm5 = vcmp.lt.f32.partialorder %v595_v2, 0.0  ;;  %vm77_vm6 = vcmask 1046528   ;;  %vm79_vm7 = vcmask 1040384  }
   0x6   :  { %v43_v6 = vmul.f32 -0.0012624911, %v42_v5  ;;  %v57_v7 = vsub.f32 1.0, %v42_v5  ;;  %v29_v8 = vadd.f32 %v27_v4, %v25_v1  ;;  %vm114_vm8 = vcmask 1041408   ;;  %v82_v44 = vld [vmem:[%s944_s1 + $0x8] sm:$0xff]  ;;  %v83_v45 = vld [vmem:[%s944_s1 + $0x10] sm:$0xff] }
   0x7   :  { %vm772_vm9 = vmmov 1   ;;  %v84_v46 = vld [vmem:[%s944_s1 + $0x18] sm:$0xff]  ;;  %v85_v47 = vld [vmem:[%s944_s1 + $0x20] sm:$0xff]  ;;  %v86_v48 = vld [vmem:[%s944_s1 + $0x28] sm:$0xff]  ;;  %vm259_vm11 = vcmask 261120   ;;  %v773_v54 = vmov 0  }
   0x8   :  { %v44_v10 = vadd.f32 0.00667009, %v43_v6  ;;  %v58_v11 = vmax.f32 %v57_v7, 0.0  ;;  %v32_v12 = vadd.f32 %v30_v9, %v29_v8  ;;  %vm709_vm10 = vmpackc.low %vm114_vm8, %vm772_vm9  ;;  %v87_v49 = vld [vmem:[%s944_s1 + $0x30] sm:$0xff]  ;;  %v88_v50 = vld [vmem:[%s944_s1 + $0x38] sm:$0xff]  ;;  %742 = vset.pattern.permute.xlu0 %v773_v54  ;;  %743 = vset.pattern.permute.xlu1 %v773_v54  ;;  %vm775_vm12 = vmmov 0  }
   0x9   :  { %v231_v51 = vld [vmem:[%s945_s2] sm:$0xff]  ;;  %v237_v53 = vld [vmem:[%s946_s3 + $0x10] sm:$0xff]  ;;  %v236_v55 = vld [vmem:[%s946_s3 + $0x8] sm:$0xff]  ;;  %s777_s20 = smov [#allocation2]  }
   0xa   :  { %v45_v13 = vmul.f32 %v44_v10, %v42_v5  ;;  %744 = vrsqrt.f32 %v58_v11  ;;  %vm61_vm1 = vcmp.eq.f32.partialorder %v58_v11, inf  ;;  %v64_v26 = vand.u32 2147483648, %v58_v11  ;;  %677 = vmatprep.mubr.msk.f32.mxu1 %vm259_vm11, %v231_v51  ;;  %v235_v52 = vld [vmem:[%s946_s3] sm:$0xff]  ;;  %251 = vperm.xlu1 %743, %v237_v53   ;;  %v238_v56 = vld [vmem:[%s946_s3 + $0x18] sm:$0xff]  ;;  %v614_v58 = vld [vmem:[%s946_s3 + $0x28] sm:$0xff]  ;;  %s587_s21 = sshll.u32 %s777_s20, 4  ;;  %s588_s21 = int_to_ptr.vmem [resolvable:$true] %s587_s21 }
   0xb   :  { %746 = vrsqrt.f32 %v32_v12  ;;  %vm35_vm2 = vcmp.eq.f32.partialorder %v32_v12, inf  ;;  %vm63_vm3 = vcmp.eq.f32.partialorder %v58_v11, 0.0  ;;  %v38_v29 = vand.u32 2147483648, %v32_v12  ;;  %241 = vperm.xlu0 %742, %v235_v52   ;;  %v613_v57 = vld [vmem:[%s946_s3 + $0x20] sm:$0xff]  ;;  %v615_v59 = vld [vmem:[%s946_s3 + $0x30] sm:$0xff]  ;;  %v616_v60 = vld [vmem:[%s946_s3 + $0x38] sm:$0xff]  ;;  %p753_p1 = scmp.lt.s32.totalorder %s588_s21, %s588_s21 }
   0xc   :  { %v46_v14 = vadd.f32 -0.017088126, %v45_v13  ;;  %vm37_vm4 = vcmp.eq.f32.partialorder %v32_v12, 0.0  ;;  %v501_v61 = vld [vmem:[%s948_s5] sm:$0x7]  ;;  %s748_s22 = scalar_lea.vmem %s588_s21, 64 }
   0xd   :  { %p749_p0 = scmp.ne.s32.totalorder %s588_s21, %s748_s22  ;;  %p754_p2 = scmp.lt.s32.totalorder %s748_s22, %s748_s22 }
   0xe   :  { %v47_v15 = vmul.f32 %v46_v14, %v42_v5  ;;  %256 = vperm.xlu1 %743, %v238_v56  }
   0xf   :  { %246 = vperm.xlu0 %742, %v236_v55   ;;  %p755_p3 = por %p754_p2, %p753_p1 }
  0x10   :  { %v48_v16 = vadd.f32 0.03089188, %v47_v15 }
  0x11   :  { %p756_p4 = pnand %p755_p3, %p749_p0 }
  0x12   :  { %v49_v17 = vmul.f32 %v48_v16, %v42_v5  ;;  %382 = vperm.xlu1 %743, %v614_v58   ;;  %v232_v16 = vld [vmem:[%s945_s2 + $0x8] sm:$0xff] }
  0x13   :  { %377 = vperm.xlu0 %742, %v613_v57  }
  0x14   :  { %v50_v18 = vadd.f32 -0.050174303, %v49_v17  ;;  %v745_v19 = vpop.eup %744  ;;  %v233_v17 = vld [vmem:[%s945_s2 + $0x10] sm:$0xff] }
  0x15   :  { %v747_v21 = vpop.eup %746  ;;  %v60_v23 = vmul.f32 %v745_v19, %v58_v11  ;;  %v609_v19 = vld [vmem:[%s945_s2 + $0x20] sm:$0xff] }
  0x16   :  { %v51_v20 = vmul.f32 %v50_v18, %v42_v5  ;;  %v34_v25 = vmul.f32 %v747_v21, %v32_v12  ;;  %392 = vperm.xlu1 %743, %v616_v60   ;;  %v234_v18 = vld [vmem:[%s945_s2 + $0x18] sm:$0xff] }
  0x17   :  { %v62_v28 = vsel %vm61_vm1, %v58_v11, %v60_v23  ;;  %387 = vperm.xlu0 %742, %v615_v59  }
  0x18   :  { %v52_v22 = vadd.f32 0.08897899, %v51_v20  ;;  %v36_v31 = vsel %vm35_vm2, %v32_v12, %v34_v25  ;;  %v65_v32 = vsel %vm63_vm3, %v64_v26, %v62_v28 }
  0x19   :  { %v39_v34 = vsel %vm37_vm4, %v38_v29, %v36_v31 }
  0x1a   :  { %v53_v24 = vmul.f32 %v52_v22, %v42_v5  ;;  %v72_v37 = vrot.slane %v39_v34, 1 }
  0x1b   :  { %504 = vperm.xlu0 %742, %v501_v61  }
  0x1c   :  { %v54_v27 = vadd.f32 -0.2145988, %v53_v24  ;;  %v78_v41 = vsel %vm77_vm6, %v24_v0, %v72_v37 }
  0x1e   :  { %v55_v30 = vmul.f32 %v54_v27, %v42_v5 }
  0x20   :  { %v56_v33 = vadd.f32 1.5707963, %v55_v30 }
  0x22   :  { %v66_v35 = vmul.f32 %v65_v32, %v56_v33 }
  0x24   :  { %v68_v36 = vsub.f32 3.1415927, %v66_v35 }
  0x26   :  { %v69_v38 = vsel %vm67_vm5, %v68_v36, %v66_v35 }
  0x27   :  { %v70_v39 = vmul.f32 2.0, %v69_v38 }
  0x29   :  { %v75_v40 = vrot.slane %v70_v39, 3 }
  0x2b   :  { %v80_v42 = vsel %vm79_vm7, %v75_v40, 1.0 }
  0x2c   :  { %v708_v43 = vpack.c.bf16 %v80_v42, %v78_v41  ;;  %v610_v42 = vld [vmem:[%s945_s2 + $0x28] sm:$0xff] }
  0x2e   :  { %710 = vmatprep.subr.msk.bf16.mxu0 %vm709_vm10, %v708_v43 }
  0x2f   :  { %713 = vmatpush3.bf16.msk.msra.mxu0 %vm709_vm10, %v708_v43  ;;  %v611_v43 = vld [vmem:[%s945_s2 + $0x30] sm:$0xff] }
  0x32   :  { %658 = vmatmul.mubr.msk.f32.vlgmr.msra.gmra.mrb[0].mxu0 %vm89_vm0, %v82_v44  ;;  %v612_v44 = vld [vmem:[%s945_s2 + $0x38] sm:$0xff] }
  0x33   :  { %660 = vmatprep.mubr.msk.f32.mxu0 %vm89_vm0, %v83_v45  ;;  %v774_v45 = vmov 0.0|0.0  }
  0x34   :  { %730 = vmatprep.subr.bf16.mxu0 %v774_v45 }
  0x36   :  { %661 = vmatmul.mubr.msk.f32.gmra.mrb[2].mxu0 %vm89_vm0, %v84_v46  ;;  %v776_v46 = vmov 0.0  }
  0x37   :  { %663 = vmatprep.mubr.msk.f32.mxu0 %vm89_vm0, %v85_v47 }
  0x3a   :  { %664 = vmatmul.mubr.msk.f32.gmra.mrb[4].mxu0 %vm89_vm0, %v86_v48 }
  0x3b   :  { %666 = vmatprep.mubr.msk.f32.mxu0 %vm89_vm0, %v87_v49 }
  0x3e   :  { %667 = vmatmul.mubr.msk.f32.gmra.mrb[6].mxu0 %vm89_vm0, %v88_v50 }
  0x3f   :  { %705 = vmatprep.mubr.msk.f32.mxu0 %vm775_vm12, %v776_v46 }
  0x89   :  { %v252_v21 = vpop.permute.xlu1 %251 }
  0x8a   :  { %v242_v20 = vpop.permute.xlu0 %241 }
  0x8d   :  { %v257_v28 = vpop.permute.xlu1 %256 }
  0x8e   :  { %v247_v22 = vpop.permute.xlu0 %246 }
  0x91   :  { %v383_v47 = vpop.permute.xlu1 %382 }
  0x92   :  { %v378_v48 = vpop.permute.xlu0 %377 }
  0x95   :  { %v393_v54 = vpop.permute.xlu1 %392 }
  0x96   :  { %v388_v57 = vpop.permute.xlu0 %387 }
 0x105   :  { %v879_v62 = vpop.f32.mrb[0].mxu0 }
 0x106   :  { %v881_v63 = vpop.f32.mrb[1].mxu0 }
 0x109   :  { %v883_v0 = vpop.f32.mrb[2].mxu0 }
 0x10a   :  { %v885_v1 = vpop.f32.mrb[3].mxu0 }
 0x10d   :  { %v665_v2 = vpop.f32.mrb[4].mxu0 }
 0x10e   :  { %v224_v3 = vadd.f32 %v665_v2, %v879_v62  ;;  %v204_v4 = vpop.f32.mrb[5].mxu0 }
 0x10f   :  { %v223_v5 = vadd.f32 %v204_v4, %v881_v63 }
 0x110   :  { %v228_v6 = vmax.f32 %v224_v3, 0.0 }
 0x111   :  { %v227_v7 = vmax.f32 %v223_v5, 0.0  ;;  %v668_v8 = vpop.f32.mrb[6].mxu0 }
 0x112   :  { %v226_v9 = vadd.f32 %v668_v8, %v883_v0  ;;  %v214_v10 = vpop.f32.mrb[7].mxu0  ;;  %v505_v8 = vpop.permute.xlu0 %504 }
 0x113   :  { %v225_v11 = vadd.f32 %v214_v10, %v885_v1  ;;  %v714_v12 = vpack.c.bf16 %v228_v6, %v227_v7 }
 0x114   :  { %v230_v13 = vmax.f32 %v226_v9, 0.0 }
 0x115   :  { %v229_v14 = vmax.f32 %v225_v11, 0.0  ;;  %715 = vmatprep.subr.bf16.mxu1 %v714_v12 }
 0x116   :  { %717 = vmatpush3.bf16.msra.mxu1 %v714_v12 }
 0x117   :  { %v718_v15 = vpack.c.bf16 %v230_v13, %v229_v14 }
 0x119   :  { %719 = vmatprep.subr.bf16.mxu1 %v718_v15 }
 0x11a   :  { %721 = vmatpush3.bf16.msra.mxu1 %v718_v15 }
 0x11d   :  { %678 = vmatmul.mubr.msk.f32.vlgmr.msra.gmra.mrb[0].mxu1 %vm259_vm11, %v232_v16 }
 0x11e   :  { %680 = vmatprep.mubr.msk.f32.mxu1 %vm259_vm11, %v233_v17 }
 0x121   :  { %681 = vmatmul.mubr.msk.f32.gmra.mrb[2].mxu1 %vm259_vm11, %v234_v18 }
 0x122   :  { %691 = vmatprep.mubr.msk.f32.mxu1 %vm259_vm11, %v609_v19 }
 0x1f0   :  { %v679_v23 = vpop.f32.mrb[0].mxu1 }
 0x1f1   :  { %v344_v24 = vadd.f32 %v679_v23, %v247_v22  ;;  %v338_v25 = vpop.f32.mrb[1].mxu1 }
 0x1f2   :  { %v339_v26 = vadd.f32 %v338_v25, %v242_v20 }
 0x1f3   :  { %v358_v27 = vadd.f32 %v879_v62, %v344_v24 }
 0x1f4   :  { %v357_v29 = vadd.f32 %v339_v26, %v881_v63  ;;  %v682_v30 = vpop.f32.mrb[2].mxu1 }
 0x1f5   :  { %v362_v31 = vmax.f32 %v358_v27, 0.0  ;;  %v354_v32 = vadd.f32 %v682_v30, %v257_v28  ;;  %v348_v33 = vpop.f32.mrb[3].mxu1 }
 0x1f6   :  { %v361_v34 = vmax.f32 %v357_v29, 0.0  ;;  %v349_v35 = vadd.f32 %v348_v33, %v252_v21 }
 0x1f7   :  { %v360_v36 = vadd.f32 %v883_v0, %v354_v32 }
 0x1f8   :  { %v359_v37 = vadd.f32 %v349_v35, %v885_v1  ;;  %v722_v38 = vpack.c.bf16 %v362_v31, %v361_v34 }
 0x1f9   :  { %v364_v39 = vmax.f32 %v360_v36, 0.0 }
 0x1fa   :  { %v363_v40 = vmax.f32 %v359_v37, 0.0  ;;  %723 = vmatprep.subr.bf16.mxu1 %v722_v38 }
 0x1fb   :  { %725 = vmatpush3.bf16.msra.mxu1 %v722_v38 }
 0x1fc   :  { %v726_v41 = vpack.c.bf16 %v364_v39, %v363_v40 }
 0x1fe   :  { %727 = vmatprep.subr.bf16.mxu1 %v726_v41 }
 0x1ff   :  { %729 = vmatpush3.bf16.msra.mxu1 %v726_v41 }
 0x202   :  { %692 = vmatmul.mubr.msk.f32.vlgmr.msra.gmra.mrb[4].mxu1 %vm259_vm11, %v610_v42 }
 0x203   :  { %694 = vmatprep.mubr.msk.f32.mxu1 %vm259_vm11, %v611_v43 }
 0x206   :  { %695 = vmatmul.mubr.msk.f32.gmra.mrb[6].mxu1 %vm259_vm11, %v612_v44 }
 0x2d5   :  { %v693_v49 = vpop.f32.mrb[4].mxu1 }
 0x2d6   :  { %v479_v50 = vadd.f32 %v693_v49, %v383_v47  ;;  %v473_v51 = vpop.f32.mrb[5].mxu1 }
 0x2d7   :  { %v474_v52 = vadd.f32 %v473_v51, %v378_v48 }
 0x2d8   :  { %v493_v53 = vadd.f32 %v879_v62, %v479_v50 }
 0x2d9   :  { %v492_v55 = vadd.f32 %v474_v52, %v881_v63  ;;  %v696_v56 = vpop.f32.mrb[6].mxu1  ;;  %v500_v63 = vld [vmem:[%s947_s4] sm:$0x7] }
 0x2da   :  { %v497_v58 = vmax.f32 %v493_v53, 0.0  ;;  %v489_v59 = vadd.f32 %v696_v56, %v393_v54  ;;  %v483_v60 = vpop.f32.mrb[7].mxu1 }
 0x2db   :  { %v496_v61 = vmax.f32 %v492_v55, 0.0  ;;  %v484_v2 = vadd.f32 %v483_v60, %v388_v57 }
 0x2dc   :  { %v495_v3 = vadd.f32 %v883_v0, %v489_v59 }
 0x2dd   :  { %v731_v4 = vpack.c.bf16 %v497_v58, %v496_v61  ;;  %v494_v5 = vadd.f32 %v484_v2, %v885_v1 }
 0x2de   :  { %v499_v6 = vmax.f32 %v495_v3, 0.0 }
 0x2df   :  { %v498_v7 = vmax.f32 %v494_v5, 0.0  ;;  %732 = vmatpush3.bf16.msra.mxu0 %v731_v4 }
 0x2e0   :  { %733 = vmatprep.subr.bf16.mxu0 %v774_v45 }
 0x2e1   :  { %v734_v62 = vpack.c.bf16 %v499_v6, %v498_v7 }
 0x2e3   :  { %735 = vmatpush3.bf16.msra.mxu0 %v734_v62 }
 0x2e6   :  { %706 = vmatmul.mubr.msk.f32.vlgmr.msra.gmra.mrb[8].mxu0 %vm259_vm11, %v500_v63 }
 0x3b9   :  { %v576_v9 = vpop.f32.mrb[8].mxu0 }
 0x3ba   :  { %v577_v0 = vadd.f32 %v576_v9, %v505_v8  ;;  %v707_v10 = vpop.f32.mrb[9].mxu0 }
 0x3bc   :  { %580 = vst [vmem:[#allocation2] sm:$0x7] %v577_v0 }
 0x3bd   :  { %759 = shalt.err (!%p756_p4)
}
 0x3be   :  { %s760_s4 = scalar_lea.hbm %s949_s6, 64 }
 0x3bf   :  { %p761_p5 = scmp.ne.s32.totalorder %s949_s6, %s760_s4  ;;  %p764_p6 = scmp.lt.u32.totalorder %s760_s4, %s949_s6 }
 0x3c1   :  { %p766_p7 = pnand %p764_p6, %p761_p5 }
 0x3c3   :  { %769 = shalt.err (!%p766_p7)
}
 0x3c4   :  { %590 = dma.vmem_to_hbm [thread:$0]  %s588_s21, 64, %s949_s6, [#allocation3]  }
 0x3c5   :  { %770 = dma.done.wait [#allocation3], 64  }
 0x3c6   :  { %771 = vsyncadd [#allocation3], 4294967232 }
 0x3c7   :  { %594 = vsyncpa [#allocation3], 1 }

</bundles_post_ra>
